<compile_context>
chip_gen: v7x
topology: tpu7x:2x2x1
jax: 0.10.0
libtpu: 0.0.40
codegen_flags: <defaults>
</compile_context>

<pallas_src>
import math
import functools

import jax
import jax.numpy as jnp
from jax.experimental import pallas as pl
from jax.experimental.pallas import tpu as pltpu


NEG_INF = -1e30


# ----------------------------- in-kernel helpers -----------------------------

def _layernorm(x, scale, shift, eps=1e-5):
    # x: (T, D) f32, scale/shift: (1, D) f32; biased variance (unbiased=False).
    mean = jnp.mean(x, axis=-1, keepdims=True)
    var = jnp.mean((x - mean) ** 2, axis=-1, keepdims=True)
    inv = jax.lax.rsqrt(var + eps)              # EUP rsqrt + multiply (no divide)
    return scale * ((x - mean) * inv) + shift


def _gelu_tanh(x):
    c = math.sqrt(2.0 / math.pi)
    return 0.5 * x * (1.0 + jnp.tanh(c * (x + 0.044715 * x * x * x)))


# ----------------------- kernel A: LN1 + fused K/V proj -----------------------

def kv_proj_kernel(x_ref, n1s_ref, n1h_ref, wkv_ref, k_ref, v_ref):
    x = x_ref[0]                                          # (TS, D) f32
    D = x.shape[-1]
    h = _layernorm(x, n1s_ref[...], n1h_ref[...])
    hb = h.astype(jnp.bfloat16)                           # bf16 MXU inputs, f32 acc
    kv = jnp.dot(hb, wkv_ref[...], preferred_element_type=jnp.float32)   # (TS, 2D)
    k_ref[0] = kv[:, :D].astype(k_ref.dtype)
    v_ref[0] = kv[:, D:].astype(v_ref.dtype)


# -- kernel B: Q on the fly + flash attention + Wo + residual + LN2 + FFN + res --

def attn_ffn_kernel(
    x_ref,                    # (1, TQ, D)  f32   residual input (query tile)
    k_ref, v_ref,             # (1, TKV, D) bf16
    n1s_ref, n1h_ref,         # (1, D) f32 each   (LN1, used to rebuild Q)
    wq_ref,                   # (D, D) bf16
    wo_ref, bo_ref,           # (D, D) bf16, (1, D) f32
    n2s_ref, n2h_ref,         # (1, D) f32 each
    w1_ref, b1_ref,           # (D, 4D) bf16, (1, 4D) f32
    w2_ref, b2_ref,           # (4D, D) bf16, (1, D) f32
    o_ref,                    # (1, TQ, D)  f32
    q_scr,                    # scratch (TQ, D)  bf16   Q pre-scaled by 1/sqrt(Dh)
    stats_scr,                # scratch (2H, TQ, 128) f32: [0:H]=m, [H:2H]=l (lane-broadcast)
    acc_scr,                  # scratch (TQ, D)  f32    lane-dense unnormalized context
    *, num_heads, head_dim, block_q, block_kv,
):
    qi = pl.program_id(1)
    kj = pl.program_id(2)
    nk = pl.num_programs(2)
    q_start = qi * block_q
    kv_start = kj * block_kv

    @pl.when(kj == 0)
    def _init():
        stats_scr[:num_heads] = jnp.full((num_heads, block_q, 128), NEG_INF, jnp.float32)
        stats_scr[num_heads:] = jnp.zeros((num_heads, block_q, 128), jnp.float32)
        acc_scr[...] = jnp.zeros_like(acc_scr)
        # Q computed from the already-resident x tile (no Q HBM traffic).
        h = _layernorm(x_ref[0], n1s_ref[...], n1h_ref[...])
        q = jnp.dot(h.astype(jnp.bfloat16), wq_ref[...],
                    preferred_element_type=jnp.float32)
        q_scr[...] = (q * (1.0 / math.sqrt(head_dim))).astype(q_scr.dtype)

    # Causality: skip KV tiles entirely in the future of this query tile.
    # (Their DMA is also suppressed by the clamped index_map in the wrapper.)
    @pl.when(kv_start < q_start + block_q)
    def _flash_step():
        # Single iota-difference compared against a scalar offset (shared by all heads).
        diff = (jax.lax.broadcasted_iota(jnp.int32, (block_q, block_kv), 0)
                - jax.lax.broadcasted_iota(jnp.int32, (block_q, block_kv), 1))
        causal = diff >= (kv_start - q_start)

        q = q_scr[...]                                    # (TQ, D)  bf16
        k = k_ref[0]                                      # (TKV, D) bf16
        v = v_ref[0]

        m_news, l_news, alphas, ctxs = [], [], [], []
        for hh in range(num_heads):                       # static unroll over heads
            lo = hh * head_dim
            hi = lo + head_dim
            # scores = q_h @ k_h^T : contract on head_dim, no explicit transpose
            s = jax.lax.dot_general(
                q[:, lo:hi], k[:, lo:hi], (((1,), (1,)), ((), ())),
                preferred_element_type=jnp.float32)       # (TQ, TKV) f32
            s = jnp.where(causal, s, NEG_INF)

            m_prev = stats_scr[hh][:, :1]                 # (TQ, 1) f32
            l_prev = stats_scr[num_heads + hh][:, :1]
            m_new = jnp.maximum(m_prev, jnp.max(s, axis=-1, keepdims=True))
            alpha = jnp.exp(m_prev - m_new)               # (TQ, 1)
            p = jnp.exp(s - m_new)                        # (TQ, TKV)
            l_new = alpha * l_prev + jnp.sum(p, axis=-1, keepdims=True)

            m_news.append(jnp.broadcast_to(m_new, (block_q, 128)))
            l_news.append(jnp.broadcast_to(l_new, (block_q, 128)))
            alphas.append(jnp.broadcast_to(alpha, (block_q, head_dim)))
            ctxs.append(jnp.dot(p.astype(jnp.bfloat16), v[:, lo:hi],
                                preferred_element_type=jnp.float32))

        # Lane-dense accumulator: one full-width (TQ, D) store per KV step.
        acc_scr[...] = (jnp.concatenate(alphas, axis=-1) * acc_scr[...]
                        + jnp.concatenate(ctxs, axis=-1))
        # Stats stored lane-broadcast -> full-width (unmasked) stores.
        for hh in range(num_heads):
            stats_scr[hh] = m_news[hh]
            stats_scr[num_heads + hh] = l_news[hh]

    @pl.when(kj == nk - 1)
    def _finalize():
        x = x_ref[0]                                      # (TQ, D) f32
        # Normalize all heads at once; fold through Wo with ONE dense K=D matmul.
        inv_parts = []
        for hh in range(num_heads):
            l_h = stats_scr[num_heads + hh][:, :head_dim]   # lane-broadcast copy of l
            inv_parts.append(pl.reciprocal(l_h, approx=True))
        ctx = (acc_scr[...] * jnp.concatenate(inv_parts, axis=-1)).astype(jnp.bfloat16)
        attn = jnp.dot(ctx, wo_ref[...], preferred_element_type=jnp.float32)
        x1 = x + attn + bo_ref[...]                       # residual 1 (dropout p=0)

        h2 = _layernorm(x1, n2s_ref[...], n2h_ref[...])
        ff = jnp.dot(h2.astype(jnp.bfloat16), w1_ref[...],
                     preferred_element_type=jnp.float32) + b1_ref[...]
        ff = _gelu_tanh(ff)
        ff = jnp.dot(ff.astype(jnp.bfloat16), w2_ref[...],
                     preferred_element_type=jnp.float32) + b2_ref[...]
        o_ref[0] = (x1 + ff).astype(o_ref.dtype)          # residual 2 (dropout p=0)


# --------------------------------- wrapper -----------------------------------

def transformer_block(x, params, *, num_heads, block_q=128, block_kv=128):
    """x: (B, S, D) float32.  params: dict of (in, out)-layout f32 weights."""
    B, S, D = x.shape
    H4 = 4 * D
    assert D % num_heads == 0
    Dh = D // num_heads
    block_q = min(block_q, S)
    block_kv = min(block_kv, S)
    assert S % block_q == 0 and S % block_kv == 0
    nq, nk = S // block_q, S // block_kv
    bf16 = jnp.bfloat16

    # bf16 weights feeding the MXU; all matmuls accumulate in f32.
    wq = params["wq"].astype(bf16)
    wkv = jnp.concatenate([params["wk"], params["wv"]], axis=1).astype(bf16)  # (D, 2D)
    wo = params["wo"].astype(bf16)
    w1 = params["w1"].astype(bf16)
    w2 = params["w2"].astype(bf16)

    # Generation-aware VMEM budget: ~75% of physical, capped at 100 MiB
    # (v7x 64 MiB -> 48 MiB, v5e/v6e 128 MiB -> 96 MiB).
    try:
        vmem_cap = int(pltpu.get_tpu_info().vmem_capacity_bytes)
    except Exception:
        vmem_cap = 64 * 1024 * 1024
    vmem_limit = min(100 * 1024 * 1024, (vmem_cap * 3) // 4)

    def cparams(sem):
        return pltpu.CompilerParams(dimension_semantics=sem,
                                    vmem_limit_bytes=vmem_limit)

    # ----- kernel A: LN1 + fused K/V projection, tiled over (batch, seq tile) -----
    seq_tile_a = pl.BlockSpec((1, block_q, D), lambda b, i: (b, i, 0))
    full_a = lambda shape: pl.BlockSpec(shape, lambda b, i: (0,) * len(shape))

    k, v = pl.pallas_call(
        kv_proj_kernel,
        out_shape=(jax.ShapeDtypeStruct((B, S, D), bf16),
                   jax.ShapeDtypeStruct((B, S, D), bf16)),
        grid_spec=pltpu.PrefetchScalarGridSpec(
            num_scalar_prefetch=0,
            grid=(B, nq),
            in_specs=[
                seq_tile_a,
                full_a((1, D)), full_a((1, D)),      # norm1 scale/shift
                full_a((D, 2 * D)),                  # fused [Wk | Wv]
            ],
            out_specs=[seq_tile_a, seq_tile_a],
        ),
        compiler_params=cparams(("parallel", "parallel")),
    )(x, params["n1_scale"], params["n1_shift"], wkv)

    # ----- kernel B: Q + flash attention + Wo + residual + LN2 + FFN + residual -----
    q_tile = pl.BlockSpec((1, block_q, D), lambda b, i, j: (b, i, 0))

    # Clamp the KV block index so causally-dead KV tiles re-use the previous block
    # (Pallas issues no new DMA when the block index does not change).
    def kv_index(b, i, j):
        last_needed = ((i + 1) * block_q - 1) // block_kv
        return (b, jnp.minimum(j, last_needed), 0)

    kv_tile = pl.BlockSpec((1, block_kv, D), kv_index)
    full_b = lambda shape: pl.BlockSpec(shape, lambda b, i, j: (0,) * len(shape))

    out = pl.pallas_call(
        functools.partial(attn_ffn_kernel, num_heads=num_heads, head_dim=Dh,
                          block_q=block_q, block_kv=block_kv),
        out_shape=jax.ShapeDtypeStruct((B, S, D), x.dtype),
        grid_spec=pltpu.PrefetchScalarGridSpec(
            num_scalar_prefetch=0,
            grid=(B, nq, nk),                    # KV reduction axis innermost
            in_specs=[
                q_tile,                           # x residual (query tile), f32
                kv_tile, kv_tile,                 # k, v (bf16, clamped index_map)
                full_b((1, D)), full_b((1, D)),   # norm1 scale/shift (for Q)
                full_b((D, D)),                   # Wq
                full_b((D, D)), full_b((1, D)),   # Wo, bo
                full_b((1, D)), full_b((1, D)),   # norm2 scale/shift
                full_b((D, H4)), full_b((1, H4)), # W1, b1
                full_b((H4, D)), full_b((1, D)),  # W2, b2
            ],
            out_specs=q_tile,
            scratch_shapes=[
                pltpu.VMEM((block_q, D), bf16),                          # Q tile
                pltpu.VMEM((2 * num_heads, block_q, 128), jnp.float32),  # m / l stats
                pltpu.VMEM((block_q, D), jnp.float32),                   # lane-dense ctx
            ],
        ),
        compiler_params=cparams(("parallel", "parallel", "arbitrary")),
    )(x, k, v, params["n1_scale"], params["n1_shift"], wq, wo, params["bo"],
      params["n2_scale"], params["n2_shift"], w1, params["b1"], w2, params["b2"])
    return out


# ----------------------------- pure-JAX reference ----------------------------

def transformer_block_ref(x, p, *, num_heads):
    B, S, D = x.shape
    Dh = D // num_heads

    def ln(v, scale, shift, eps=1e-5):
        mean = v.mean(-1, keepdims=True)
        var = ((v - mean) ** 2).mean(-1, keepdims=True)
        return scale * (v - mean) / jnp.sqrt(var + eps) + shift

    h = ln(x, p["n1_scale"], p["n1_shift"])
    q = h @ p["wq"]; k = h @ p["wk"]; v = h @ p["wv"]
    q = q.reshape(B, S, num_heads, Dh).transpose(0, 2, 1, 3)
    k = k.reshape(B, S, num_heads, Dh).transpose(0, 2, 1, 3)
    v = v.reshape(B, S, num_heads, Dh).transpose(0, 2, 1, 3)
    scores = jnp.einsum("bhqd,bhkd->bhqk", q, k) / math.sqrt(Dh)
    mask = jnp.tril(jnp.ones((S, S), bool))
    scores = jnp.where(mask, scores, -jnp.inf)
    attn = jax.nn.softmax(scores, axis=-1)
    ctx = jnp.einsum("bhqk,bhkd->bhqd", attn, v).transpose(0, 2, 1, 3).reshape(B, S, D)
    x = x + (ctx @ p["wo"] + p["bo"])

    h2 = ln(x, p["n2_scale"], p["n2_shift"])
    ff = h2 @ p["w1"] + p["b1"]
    c = math.sqrt(2.0 / math.pi)
    ff = 0.5 * ff * (1.0 + jnp.tanh(c * (ff + 0.044715 * ff ** 3)))
    ff = ff @ p["w2"] + p["b2"]
    return x + ff


# ------------------------------------ main ------------------------------------

if __name__ == "__main__":
    # Small config consistent with the module (emb_dim divisible by n_heads).
    # S=256 with 128-tiles exercises multiple query/KV tiles, the causal-skip and
    # the clamped KV index_map; B*nq = 4 keeps both v7x TensorCores busy.
    cfg = dict(emb_dim=128, context_length=256, n_heads=4, drop_rate=0.0, qkv_bias=False)
    B, S, D = 2, cfg["context_length"], cfg["emb_dim"]
    H4 = 4 * D

    ks = jax.random.split(jax.random.PRNGKey(0), 14)
    params = {
        "n1_scale": 1.0 + 0.1 * jax.random.normal(ks[0], (1, D), jnp.float32),
        "n1_shift": 0.1 * jax.random.normal(ks[1], (1, D), jnp.float32),
        # linear weights stored (in, out): equivalent to torch nn.Linear weight.T
        "wq": 0.02 * jax.random.normal(ks[2], (D, D), jnp.float32),
        "wk": 0.02 * jax.random.normal(ks[3], (D, D), jnp.float32),
        "wv": 0.02 * jax.random.normal(ks[4], (D, D), jnp.float32),
        "wo": 0.02 * jax.random.normal(ks[5], (D, D), jnp.float32),
        "bo": 0.01 * jax.random.normal(ks[6], (1, D), jnp.float32),
        "n2_scale": 1.0 + 0.1 * jax.random.normal(ks[7], (1, D), jnp.float32),
        "n2_shift": 0.1 * jax.random.normal(ks[8], (1, D), jnp.float32),
        "w1": 0.02 * jax.random.normal(ks[9], (D, H4), jnp.float32),
        "b1": 0.01 * jax.random.normal(ks[10], (1, H4), jnp.float32),
        "w2": 0.02 * jax.random.normal(ks[11], (H4, D), jnp.float32),
        "b2": 0.01 * jax.random.normal(ks[12], (1, D), jnp.float32),
    }
    x = jax.random.uniform(ks[13], (B, S, D), jnp.float32)

    out = transformer_block(x, params, num_heads=cfg["n_heads"],
                            block_q=128, block_kv=128)
    out = jax.block_until_ready(out)

    ref = transformer_block_ref(x, params, num_heads=cfg["n_heads"])
    assert out.shape == (B, S, D)
    # bf16 MXU inputs + approx reciprocal -> compare against the f32 reference
    # with a tolerance appropriate for mixed precision.
    max_err = float(jnp.max(jnp.abs(out - ref)))
    assert jnp.allclose(out, ref, atol=2e-2, rtol=2e-2), (
        f"mismatch vs JAX reference (max abs err {max_err})")

    print("KERNEL_OK")
</pallas_src>

<mosaic_0001>
module attributes {stable_mosaic.version = 11 : i64} {
  func.func @kv_proj_kernel(%arg0: i32, %arg1: i32, %arg2: memref<1x128x128xf32, #tpu.memory_space<vmem>>, %arg3: memref<1x128xf32, #tpu.memory_space<vmem>>, %arg4: memref<1x128xf32, #tpu.memory_space<vmem>>, %arg5: memref<128x256xbf16, #tpu.memory_space<vmem>>, %arg6: memref<1x128x128xbf16, #tpu.memory_space<vmem>>, %arg7: memref<1x128x128xbf16, #tpu.memory_space<vmem>>) attributes {dimension_semantics = [#tpu.dimension_semantics<parallel>, #tpu.dimension_semantics<parallel>], iteration_bounds = array<i64: 2, 2>, scalar_prefetch = 0 : i64, scratch_operands = 0 : i64, tpu.core_type = #tpu.core_type<tc>, window_params = [{transform_indices = @transform_0, window_bounds = array<i64: 1, 128, 128>}, {pipeline_mode = #tpu.pipeline_mode<synchronous>, transform_indices = @transform_1, window_bounds = array<i64: 1, 128>}, {pipeline_mode = #tpu.pipeline_mode<synchronous>, transform_indices = @transform_2, window_bounds = array<i64: 1, 128>}, {pipeline_mode = #tpu.pipeline_mode<synchronous>, transform_indices = @transform_3, window_bounds = array<i64: 128, 256>}, {transform_indices = @transform_4, window_bounds = array<i64: 1, 128, 128>}, {transform_indices = @transform_5, window_bounds = array<i64: 1, 128, 128>}]} {
    %c0 = arith.constant 0 : index
    %c0_0 = arith.constant 0 : index
    %c0_1 = arith.constant 0 : index
    %0 = vector.load %arg2[%c0, %c0_0, %c0_1] : memref<1x128x128xf32, #tpu.memory_space<vmem>>, vector<1x128x128xf32>
    %1 = vector.shape_cast %0 : vector<1x128x128xf32> to vector<128x128xf32>
    %c0_2 = arith.constant 0 : index
    %c0_3 = arith.constant 0 : index
    %2 = vector.load %arg3[%c0_2, %c0_3] : memref<1x128xf32, #tpu.memory_space<vmem>>, vector<1x128xf32>
    %c0_4 = arith.constant 0 : index
    %c0_5 = arith.constant 0 : index
    %3 = vector.load %arg4[%c0_4, %c0_5] : memref<1x128xf32, #tpu.memory_space<vmem>>, vector<1x128xf32>
    %cst = arith.constant dense<0.000000e+00> : vector<128xf32>
    %4 = vector.multi_reduction <add>, %1, %cst [1] : vector<128x128xf32> to vector<128xf32>
    %5 = vector.shape_cast %4 : vector<128xf32> to vector<128x1xf32>
    %cst_6 = arith.constant 1.280000e+02 : f32
    %6 = vector.broadcast %cst_6 : f32 to vector<128x1xf32>
    %7 = arith.divf %5, %6 : vector<128x1xf32>
    %8 = vector.broadcast %7 : vector<128x1xf32> to vector<128x128xf32>
    %9 = arith.subf %1, %8 : vector<128x128xf32>
    %10 = arith.mulf %9, %9 : vector<128x128xf32>
    %cst_7 = arith.constant dense<0.000000e+00> : vector<128xf32>
    %11 = vector.multi_reduction <add>, %10, %cst_7 [1] : vector<128x128xf32> to vector<128xf32>
    %12 = vector.shape_cast %11 : vector<128xf32> to vector<128x1xf32>
    %cst_8 = arith.constant 1.280000e+02 : f32
    %13 = vector.broadcast %cst_8 : f32 to vector<128x1xf32>
    %14 = arith.divf %12, %13 : vector<128x1xf32>
    %cst_9 = arith.constant 9.99999974E-6 : f32
    %15 = vector.broadcast %cst_9 : f32 to vector<128x1xf32>
    %16 = arith.addf %14, %15 : vector<128x1xf32>
    %17 = math.rsqrt %16 : vector<128x1xf32>
    %18 = vector.broadcast %7 : vector<128x1xf32> to vector<128x128xf32>
    %19 = arith.subf %1, %18 : vector<128x128xf32>
    %20 = vector.broadcast %17 : vector<128x1xf32> to vector<128x128xf32>
    %21 = arith.mulf %19, %20 : vector<128x128xf32>
    %22 = vector.broadcast %2 : vector<1x128xf32> to vector<128x128xf32>
    %23 = arith.mulf %22, %21 : vector<128x128xf32>
    %24 = vector.broadcast %3 : vector<1x128xf32> to vector<128x128xf32>
    %25 = arith.addf %23, %24 : vector<128x128xf32>
    %26 = arith.truncf %25 : vector<128x128xf32> to vector<128x128xbf16>
    %c0_10 = arith.constant 0 : index
    %c0_11 = arith.constant 0 : index
    %27 = vector.load %arg5[%c0_10, %c0_11] : memref<128x256xbf16, #tpu.memory_space<vmem>>, vector<128x256xbf16>
    %cst_12 = arith.constant dense<0.000000e+00> : vector<128x256xf32>
    %28 = tpu.matmul %26, %27, %cst_12 {dimension_numbers = #tpu.dot_dimension_numbers<[1], [0], [0], [1], [0, 0, 1, 1], [], []>} : vector<128x128xbf16>, vector<128x256xbf16>, vector<128x256xf32> -> vector<128x256xf32>
    %29 = vector.extract_strided_slice %28 {offsets = [0, 0], sizes = [128, 128], strides = [1, 1]} : vector<128x256xf32> to vector<128x128xf32>
    %30 = arith.truncf %29 : vector<128x128xf32> to vector<128x128xbf16>
    %c0_13 = arith.constant 0 : index
    %c0_14 = arith.constant 0 : index
    %c0_15 = arith.constant 0 : index
    %31 = vector.load %arg6[%c0_13, %c0_14, %c0_15] : memref<1x128x128xbf16, #tpu.memory_space<vmem>>, vector<1x128x128xbf16>
    %32 = vector.shape_cast %31 : vector<1x128x128xbf16> to vector<128x128xbf16>
    %33 = vector.shape_cast %30 : vector<128x128xbf16> to vector<1x128x128xbf16>
    tpu.vector_store %arg6[%c0_13, %c0_14, %c0_15], %33 {strides = array<i32>} : memref<1x128x128xbf16, #tpu.memory_space<vmem>>, vector<1x128x128xbf16>,
    %34 = vector.extract_strided_slice %28 {offsets = [0, 128], sizes = [128, 128], strides = [1, 1]} : vector<128x256xf32> to vector<128x128xf32>
    %35 = arith.truncf %34 : vector<128x128xf32> to vector<128x128xbf16>
    %c0_16 = arith.constant 0 : index
    %c0_17 = arith.constant 0 : index
    %c0_18 = arith.constant 0 : index
    %36 = vector.load %arg7[%c0_16, %c0_17, %c0_18] : memref<1x128x128xbf16, #tpu.memory_space<vmem>>, vector<1x128x128xbf16>
    %37 = vector.shape_cast %36 : vector<1x128x128xbf16> to vector<128x128xbf16>
    %38 = vector.shape_cast %35 : vector<128x128xbf16> to vector<1x128x128xbf16>
    tpu.vector_store %arg7[%c0_16, %c0_17, %c0_18], %38 {strides = array<i32>} : memref<1x128x128xbf16, #tpu.memory_space<vmem>>, vector<1x128x128xbf16>,
    return
  }
  func.func @transform_0(%arg0: i32, %arg1: i32) -> (i32, i32, i32) {
    %c0_i32 = arith.constant 0 : i32
    %c0_i32_0 = arith.constant 0 : i32
    return %arg0, %arg1, %c0_i32 : i32, i32, i32
  }
  func.func @transform_1(%arg0: i32, %arg1: i32) -> (i32, i32) {
    %c0_i32 = arith.constant 0 : i32
    %c0_i32_0 = arith.constant 0 : i32
    %c0_i32_1 = arith.constant 0 : i32
    return %c0_i32, %c0_i32_0 : i32, i32
  }
  func.func @transform_2(%arg0: i32, %arg1: i32) -> (i32, i32) {
    %c0_i32 = arith.constant 0 : i32
    %c0_i32_0 = arith.constant 0 : i32
    %c0_i32_1 = arith.constant 0 : i32
    return %c0_i32, %c0_i32_0 : i32, i32
  }
  func.func @transform_3(%arg0: i32, %arg1: i32) -> (i32, i32) {
    %c0_i32 = arith.constant 0 : i32
    %c0_i32_0 = arith.constant 0 : i32
    %c0_i32_1 = arith.constant 0 : i32
    return %c0_i32, %c0_i32_0 : i32, i32
  }
  func.func @transform_4(%arg0: i32, %arg1: i32) -> (i32, i32, i32) {
    %c0_i32 = arith.constant 0 : i32
    %c0_i32_0 = arith.constant 0 : i32
    return %arg0, %arg1, %c0_i32 : i32, i32, i32
  }
  func.func @transform_5(%arg0: i32, %arg1: i32) -> (i32, i32, i32) {
    %c0_i32 = arith.constant 0 : i32
    %c0_i32_0 = arith.constant 0 : i32
    return %arg0, %arg1, %c0_i32 : i32, i32, i32
  }
}

</mosaic_0001>

<bundles_post_ra>
// kernel: tpu_custom_call.1
= control target key start
LH: loop header
LB: loop body
LE: loop exit
PB: predicated region body
PF: predicated region fallthrough
CT: control target
= control target key end

     0   :  { %s2176_s0 = inlined_call_operand.hbm [shape: f32[2,256,128], index: 0, kind: input, shape index: {}]   ;;  %s2177_s1 = inlined_call_operand.vmem [shape: f32[1,128], index: 1, kind: input, shape index: {}]   ;;  %s2178_s2 = inlined_call_operand.vmem [shape: f32[1,128], index: 2, kind: input, shape index: {}]   ;;  %s2179_s3 = inlined_call_operand.hbm [shape: bf16[128,256], index: 3, kind: input, shape index: {}]   ;;  %s2180_s4 = inlined_call_operand.hbm [shape: bf16[2,256,128], index: 4, kind: output, shape index: {0}]   ;;  %s2181_s5 = inlined_call_operand.hbm [shape: bf16[2,256,128], index: 5, kind: output, shape index: {1}]  }
   0x1   :  { %2194 = sst [smem:[#allocation19_spill]] %s2179_s3 }
   0x2   :  { %2195 = sst [smem:[#allocation20_spill]] %s2181_s5 }
   0x3   :  { %11 = vsyncpa [#allocation3], 0 }
   0x4   :  { %13 = vsyncpa [#allocation3 + $0x1], 0 }
   0x5   :  { %14 = vsyncpa [#allocation6], 0 }
   0x6   :  { %15 = vsyncpa [#allocation4], 0 }
   0x7   :  { %17 = vsyncpa [#allocation4 + $0x1], 0 }
   0x8   :  { %18 = vsyncpa [#allocation9], 0 }
   0x9   :  { %20 = vsyncpa [#allocation9 + $0x1], 0  ;;  %s1687_s18 = smov 0   ;;  %s1689_s19 = smov 0  }
   0xa   :  { %s1691_s20 = smov 0   ;;  %s1693_s21 = smov 0  }
   0xb   :  { %s1695_s22 = smov 0   ;;  %s1697_s23 = smov 0  }
   0xc   :  { %s1699_s24 = smov 0   ;;  %s1701_s25 = smov 0  }
   0xd LB: > { %2196 = sst [smem:[#allocation14_spill]] %s1618_s18  ;;  %s1083_s26 = sadd.s32 4294967295, %s1646_s25   ;;  %s1646_s25 = sphi %s1701_s25, %s26_s25   ;;  %s1642_s24 = sphi %s1699_s24, %s2229_s24   ;;  %s1638_s23 = sphi %s1697_s23, %s2223_s23   ;;  %s1634_s22 = sphi %s1695_s22, %s2228_s22   ;;  %s1630_s21 = sphi %s1693_s21, %s2222_s21   ;;  %s1626_s20 = sphi %s1691_s20, %s2227_s20   ;;  %s1622_s19 = sphi %s1689_s19, %s2226_s19   ;;  %s1618_s18 = sphi %s1687_s18, %s2225_s18  }
   0xe   : > { %2197 = sst [smem:[#allocation15_spill]] %s1638_s23  ;;  %s1084_s27 = sadd.s32 4294967294, %s1646_s25  }
   0xf   : > { %p60_p0 = scmp.ne.s32.totalorder %s1622_s19, %s1618_s18  ;;  %p1731_p1 = scmp.eq.s32.totalorder %s1083_s26, 0 }
  0x10   : > { %p1735_p2 = scmp.eq.s32.totalorder %s1083_s26, 3  ;;  %p155_p3 = scmp.eq.s32.totalorder %s1084_s27, 3 }
  0x11   : > { %s2198_s28 = scalar_select %p1731_p1, 1, 0 }
  0x12   : > { %s2199_s29 = scalar_select %p1735_p2, 1, 0 }
  0x13   : > { %p1741_p4 = por %p1731_p1, %p60_p0  ;;  %p1085_p5 = scmp.ge.s32.totalorder %s1646_s25, 1 }
  0x14   : > { %p1746_p6 = por %p155_p3, %p60_p0  ;;  %p190_p7 = scmp.lt.s32.totalorder %s1646_s25, 5 }
  0x15   : > { %s2200_s30 = scalar_select %p1741_p4, 1, 0 }
  0x16   : > { %s2201_s6 = scalar_select %p1746_p6, 1, 0 }
  0x17   : > { %p1751_p8 = pnand %p1085_p5, %p190_p7  ;;  %s1648_s8 = smov [#allocation5]  }
  0x18   : > { %2202 = sst [smem:[#allocation16_spill]] %s2201_s6  ;;  %s208_s9 = sshll.u32 %s1648_s8, 4  ;;  %s209_s9 = int_to_ptr.vmem [resolvable:$true] %s208_s9 }
  0x19   : > { %s2203_s7 = scalar_select %p1751_p8, 1, 0 }
  0x1a   : > { %p1309_p9 = pneg %p1751_p8  ;;  %s2205_s3 = sld [smem:[#allocation19_spill]] }
  0x1c   : > { %p1759_p10 = pnand %p1309_p9, %p1731_p1 }
  0x1e   : > { %p1456_p12 = pneg %p1759_p10 }
  0x20   : > { %s1454_s13 = scalar_lea.hbm %s2205_s3, 2048 }
  0x21   : > { %p1455_p11 = scmp.ne.s32.totalorder %s2205_s3, %s1454_s13  ;;  %p1461_p3 = scmp.lt.u32.totalorder %s1454_s13, %s2205_s3 }
  0x23   : > { %p1457_p13 = pnand %p1456_p12, %p1455_p11 }
  0x25   : > { %p1458_p0 = pneg %p1457_p13 }
  0x27   : > { %p1463_p5 = pnand %p1461_p3, %p1458_p0 }
  0x29   : > { %1466 = shalt.err (!%p1463_p5)
}
  0x2a   : > { %s1467_s26 = scalar_lea.vmem %s209_s9, 2048  ;;  %p1475_p1 = scmp.lt.s32.totalorder %s209_s9, %s209_s9 }
  0x2b   : > { %p1468_p7 = scmp.ne.s32.totalorder %s209_s9, %s1467_s26  ;;  %p1476_p4 = scmp.lt.s32.totalorder %s1467_s26, %s1467_s26 }
  0x2d   : > { %p1470_p9 = pnand %p1468_p7, %p1456_p12  ;;  %p1477_p8 = por %p1476_p4, %p1475_p1 }
  0x2f   : > { %p1471_p6 = pneg %p1470_p9 }
  0x31   : > { %p1478_p2 = pnand %p1477_p8, %p1471_p6 }
  0x33   : > { %1481 = shalt.err (!%p1478_p2)
}
  0x34   : > { %s2186_s27 = smov 128   ;;  %s2187_s8 = smov 8  }
  0x35   : > { %1312 = dma.hbm_to_vmem [thread:$0]  (!%p1759_p10), %s2205_s3, 2048, %s209_s9, [#allocation6], %s2186_s27, %s2186_s27, %s2187_s8  }
  0x36   : > { %s35_s13 = sadd.s32 1, %s1638_s23  ;;  %s38_s14 = sadd.s32 1, %s1642_s24 }
  0x37   : > { %p36_p1 = scmp.ge.s32.totalorder %s35_s13, 2  ;;  %s47_s15 = sadd.s32 1, %s1626_s20 }
  0x38   : > { %p54_p2 = scmp.ne.s32.totalorder %s1626_s20, %s1622_s19  ;;  %p55_p4 = scmp.eq.s32.totalorder %s1646_s25, 0 }
  0x39   : > { %s2231_s13 = smov (%p36_p1, %s35_s13), 0  ;;  %s2233_s14 = smov (!%p36_p1, %s38_s14), %s1642_s24 }
  0x3a   : > { %2206 = sst [smem:[#allocation17_spill]] %s2231_s13  ;;  %s43_s10 = ssub.s32 %s1638_s23, %s2231_s13 }
  0x3b   : > { %p40_p6 = scmp.ge.s32.totalorder %s2233_s14, 2  ;;  %p2207_p8 = scmp.ne.s32.totalorder %s2199_s29, 0 }
  0x3c   : > { %p1799_p10 = por %p55_p4, %p54_p2  ;;  %p1325_p12 = scmp.lt.s32.totalorder %s1646_s25, 4 }
  0x3d   : > { %p1795_p11 = por %p2207_p8, %p54_p2  ;;  %s2235_s14 = smov (%p40_p6, %s2233_s14), 0 }
  0x3e   : > { %2210 = sst [smem:[#allocation18_spill]] %s2235_s14  ;;  %s222_s17 = sand.u32 1, %s1626_s20  }
  0x3f   : > { %s1089_s26 = sshll.u32 %s1638_s23, 4  ;;  %s42_s11 = ssub.s32 %s1642_s24, %s2235_s14 }
  0x40   : > { %s44_s12 = sor.u32 %s43_s10, %s42_s11  ;;  %s1088_s27 = sshll.u32 %s222_s17, 7 }
  0x41   : > { %p45_p13 = scmp.eq.s32.totalorder %s44_s12, 0  ;;  %s1090_s29 = sshll.u32 %s1642_s24, 5 }
  0x42   : > { %s226_s8 = scalar_lea.vmem [#allocation2], %s1088_s27  ;;  %s232_s6 = sadd.s32 %s1090_s29, %s1089_s26 }
  0x43   : > { %s235_s3 = sshll.u32 %s226_s8, 4  ;;  %s1091_s18 = sshll.u32 %s232_s6, 7  ;;  %s1814_s3 = int_to_ptr.vmem [resolvable:$true] %s235_s3 }
  0x44   : > { %s1812_s13 = scalar_select %p45_p13, %s1626_s20, %s47_s15  }
  0x45   : > { %p1820_p0 = pnand %p1325_p12, %p1799_p10  ;;  %s1827_s10 = scalar_lea.hbm %s2176_s0, %s1091_s18 }
  0x46   : > { %s1829_s27 = scalar_lea.sflag [#allocation3], %s222_s17  ;;  %s1482_s6 = scalar_lea.hbm %s1827_s10, 2048 }
  0x47   : > { %p1483_p3 = scmp.ne.s32.totalorder %s1827_s10, %s1482_s6  ;;  %p1484_p5 = pneg %p1820_p0 }
  0x48   : > { %s1487_s14 = scalar_lea.hbm %s2176_s0, 8192  ;;  %p1488_p1 = scmp.lt.u32.totalorder %s1827_s10, %s2176_s0 }
  0x49   : > { %p1485_p7 = pnand %p1484_p5, %p1483_p3  ;;  %p1489_p2 = scmp.lt.u32.totalorder %s1487_s14, %s1482_s6 }
  0x4a   : > { %p1491_p6 = scmp.lt.u32.totalorder %s1482_s6, %s1827_s10 }
  0x4b   : > { %p1486_p9 = pneg %p1485_p7  ;;  %p1490_p4 = por %p1489_p2, %p1488_p1 }
  0x4d   : > { %p1492_p8 = por %p1491_p6, %p1490_p4 }
  0x4f   : > { %p1493_p10 = pnand %p1492_p8, %p1486_p9 }
  0x51   : > { %1496 = shalt.err (!%p1493_p10)
}
  0x52   : > { %s1497_s9 = scalar_lea.vmem %s1814_s3, 2048  ;;  %s1651_s17 = smov [#allocation2]  }
  0x53   : > { %p1498_p12 = scmp.ne.s32.totalorder %s1814_s3, %s1497_s9  ;;  %s1502_s26 = sshll.u32 %s1651_s17, 4  ;;  %s1503_s26 = int_to_ptr.vmem [resolvable:$false] %s1502_s26 }
  0x54   : > { %s1504_s11 = scalar_lea.vmem %s1503_s26, 4096  ;;  %p1505_p7 = scmp.lt.s32.totalorder %s1814_s3, %s1503_s26 }
  0x55   : > { %p1500_p13 = pnand %p1498_p12, %p1484_p5  ;;  %p1506_p1 = scmp.lt.s32.totalorder %s1504_s11, %s1497_s9 }
  0x57   : > { %p1501_p3 = pneg %p1500_p13  ;;  %p1507_p2 = por %p1506_p1, %p1505_p7 }
  0x59   : > { %p1508_p4 = pnand %p1507_p2, %p1501_p3 }
  0x5b   : > { %1511 = shalt.err (!%p1508_p4)
}
  0x5c   : > { %s2212_s12 = smov 8   ;;  %s2213_s29 = smov 128  }
  0x5d   : > { %1316 = dma.hbm_to_vmem [thread:$0]  (!%p1820_p0), %s1827_s10, 2048, %s1814_s3, %s1829_s27, %s2213_s29, %s2213_s29, %s2212_s12  }
  0x5e   : > { %p2214_p5 = scmp.ne.s32.totalorder %s2203_s7, 0 }
  0x5f   : > { %s1863_s6 = sand.u32 (!%p2214_p5), 1, %s1622_s19   ;;  %p2215_p9 = scmp.ne.s32.totalorder (!%p2214_p5), %s2200_s30, 0 }
  0x60   : > { %247 = sbr.rel (%p2214_p5) target bundleno = 708 (0x2c4), region = 36  ;;  %s1093_s8 = sshll.u32 (!%p2214_p5), %s1863_s6, 7 }
  0x61   : > { %s250_s23 = scalar_lea.sflag (!%p2214_p5), [#allocation3], %s1863_s6  ;;  %s1867_s14 = scalar_lea.vmem (!%p2214_p5), [#allocation2], %s1093_s8 }
  0x67   : > { %1601 = dma.done.wait (%p2215_p9), %s250_s23, 2048  }
  0x68   : > { %1603 = vsyncadd (%p2215_p9), %s250_s23, 4294965248  ;;  %p2216_p0 = scmp.ne.s32.totalorder %s2198_s28, 0 }
  0x6a   : > { %1605 = dma.done.wait (%p2216_p0), [#allocation6], 2048  }
  0x6b   : > { %1607 = vsyncadd (%p2216_p0), [#allocation6], 4294965248  ;;  %v293_v0 = vld [vmem:[%s1867_s14] sm:$0xff]  ;;  %v294_v2 = vld [vmem:[%s1867_s14 + $0x8] sm:$0xff]  ;;  %s1095_s7 = sshll.u32 %s1863_s6, 6  ;;  %s1149_s18 = sshll.u32 %s1630_s21, 4 }
  0x6c   : > { %v301_v1 = vld [vmem:[%s1867_s14 + $0x40] sm:$0xff]  ;;  %311 = vadd.xlane.f32.xlu0 %v293_v0  ;;  %v302_v3 = vld [vmem:[%s1867_s14 + $0x48] sm:$0xff]  ;;  %v295_v4 = vld [vmem:[%s1867_s14 + $0x10] sm:$0xff]  ;;  %s2056_s10 = scalar_lea.vmem [#allocation7], %s1095_s7  ;;  %s2059_s27 = scalar_lea.vmem [#allocation8], %s1095_s7 }
  0x6d   : > { %327 = vadd.xlane.f32.xlu1 %v301_v1  ;;  %v296_v5 = vld [vmem:[%s1867_s14 + $0x18] sm:$0xff]  ;;  %v303_v6 = vld [vmem:[%s1867_s14 + $0x50] sm:$0xff]  ;;  %v1886_v8 = vld [vmem:[%s1867_s14 + $0x20] sm:$0xff]  ;;  %s1150_s15 = sshll.u32 %s1634_s22, 5  ;;  %s930_s17 = sshll.u32 %s2056_s10, 4  ;;  %s2076_s17 = int_to_ptr.vmem [resolvable:$true] %s930_s17 }
  0x6e   : > { %v304_v7 = vld [vmem:[%s1867_s14 + $0x58] sm:$0xff]  ;;  %v1889_v9 = vld [vmem:[%s1867_s14 + $0x28] sm:$0xff]  ;;  %v1894_v10 = vld [vmem:[%s1867_s14 + $0x60] sm:$0xff]  ;;  %s927_s9 = sadd.s32 %s1150_s15, %s1149_s18  ;;  %s948_s26 = sshll.u32 %s2059_s27, 4  ;;  %s2078_s26 = int_to_ptr.vmem [resolvable:$true] %s948_s26 }
  0x6f   : > { %v1897_v11 = vld [vmem:[%s1867_s14 + $0x68] sm:$0xff]  ;;  %v1902_v12 = vld [vmem:[%s1867_s14 + $0x30] sm:$0xff]  ;;  %v1905_v13 = vld [vmem:[%s1867_s14 + $0x38] sm:$0xff]  ;;  %s1151_s21 = sshll.u32 %s927_s9, 6  ;;  %s2217_s23 = sld [smem:[#allocation20_spill]] }
  0x70   : > { %313 = vadd.xlane.f32.xlu0 %v294_v2  ;;  %v1910_v14 = vld [vmem:[%s1867_s14 + $0x70] sm:$0xff]  ;;  %v1913_v15 = vld [vmem:[%s1867_s14 + $0x78] sm:$0xff]  ;;  %v1398_v16 = vld [vmem:[#allocation5 + $0x4] ss:$8 sps:$4 sm:$0xff]   ;;  %s2085_s12 = scalar_lea.hbm %s2180_s4, %s1151_s21  ;;  %s910_s5 = scalar_lea.sflag [#allocation4], %s1863_s6 }
  0x71   : > { %329 = vadd.xlane.f32.xlu1 %v302_v3  ;;  %v1400_v17 = vld [vmem:[#allocation5] ss:$8 sps:$4 sm:$0xff]   ;;  %v1401_v18 = vld [vmem:[#allocation5 + $0x14] ss:$8 sps:$4 sm:$0xff]   ;;  %636 = vmatprep.subr.bf16.mxu0 %v1398_v16  ;;  %v1403_v57 = vld [vmem:[#allocation5 + $0x10] ss:$8 sps:$4 sm:$0xff]  }
  0x72   : > { %1283 = vmatprep.subr.bf16.mxu1 %v1398_v16  ;;  %637 = vmatpush1.bf16.msra.mxu0 %v1400_v17  ;;  %v1404_v63 = vld [vmem:[#allocation5 + $0x24] ss:$8 sps:$4 sm:$0xff]   ;;  %v1407_v16 = vld [vmem:[#allocation5 + $0x34] ss:$8 sps:$4 sm:$0xff]   ;;  %s1512_s28 = scalar_lea.vmem %s2076_s17, 1024  ;;  %s1653_s30 = smov [#allocation7]  }
  0x73   : > { %1291 = vmatpush1.bf16.msra.mxu1 %v1400_v17  ;;  %638 = vmatprep.subr.bf16.mxu0 %v1401_v18  ;;  %p1513_p6 = scmp.ne.s32.totalorder %s2076_s17, %s1512_s28  ;;  %s1516_s7 = sshll.u32 %s1653_s30, 4  ;;  %s1517_s7 = int_to_ptr.vmem [resolvable:$false] %s1516_s7 }
  0x74   : > { %315 = vadd.xlane.f32.xlu0 %v295_v4  ;;  %1284 = vmatprep.subr.bf16.mxu1 %v1401_v18  ;;  %s1518_s18 = scalar_lea.vmem %s1517_s7, 2048  ;;  %p1519_p12 = scmp.lt.s32.totalorder %s2076_s17, %s1517_s7 }
  0x75   : > { %317 = vadd.xlane.f32.xlu1 %v296_v5  ;;  %s2218_s14 = smov %s2217_s23  ;;  %s2090_s3 = scalar_lea.hbm %s2217_s23, %s1151_s21 }
  0x76   : > { %639 = vmatpush1.bf16.msra.mxu0 %v1403_v57  ;;  %p1514_p8 = pnand %p1513_p6, %p1795_p11  ;;  %p1520_p13 = scmp.lt.s32.totalorder %s1518_s18, %s1512_s28 }
  0x77   : > { %1292 = vmatpush1.bf16.msra.mxu1 %v1403_v57  ;;  %640 = vmatprep.subr.bf16.mxu0 %v1404_v63 }
  0x78   : > { %331 = vadd.xlane.f32.xlu0 %v303_v6  ;;  %1285 = vmatprep.subr.bf16.mxu1 %v1404_v63  ;;  %p1515_p10 = pneg %p1514_p8  ;;  %p1521_p3 = por %p1520_p13, %p1519_p12 }
  0x79   : > { %333 = vadd.xlane.f32.xlu1 %v304_v7 }
  0x7a   : > { %p1522_p7 = pnand %p1521_p3, %p1515_p10 }
  0x7c   : > { %319 = vadd.xlane.f32.xlu0 %v1886_v8 }
  0x7d   : > { %321 = vadd.xlane.f32.xlu1 %v1889_v9 }
  0x80   : > { %335 = vadd.xlane.f32.xlu0 %v1894_v10 }
  0x81   : > { %337 = vadd.xlane.f32.xlu1 %v1897_v11 }
  0x84   : > { %323 = vadd.xlane.f32.xlu0 %v1902_v12 }
  0x85   : > { %325 = vadd.xlane.f32.xlu1 %v1905_v13 }
  0x88   : > { %339 = vadd.xlane.f32.xlu0 %v1910_v14 }
  0x89   : > { %341 = vadd.xlane.f32.xlu1 %v1913_v15 }
  0xf9   : > { %v312_v19 = vpop.xlane.xlu0 %311 }
  0xfa   : > { %v328_v20 = vpop.xlane.xlu1 %327  ;;  %v344_v21 = vmul.f32 0.0078125, %v312_v19  ;;  %v1409_v19 = vld [vmem:[#allocation5 + $0x30] ss:$8 sps:$4 sm:$0xff]  }
  0xfb   : > { %v352_v22 = vmul.f32 0.0078125, %v328_v20 }
  0xfc   : > { %v1917_v23 = vsub.f32 %v293_v0, %v344_v21 }
  0xfd   : > { %v1919_v24 = vsub.f32 %v301_v1, %v352_v22  ;;  %v314_v25 = vpop.xlane.xlu0 %313 }
  0xfe   : > { %v330_v26 = vpop.xlane.xlu1 %329  ;;  %v345_v27 = vmul.f32 0.0078125, %v314_v25  ;;  %v376_v28 = vmul.f32 %v1917_v23, %v1917_v23 }
  0xff   : > { %v353_v29 = vmul.f32 0.0078125, %v330_v26  ;;  %v384_v32 = vmul.f32 %v1919_v24, %v1919_v24  ;;  %v1410_v26 = vld [vmem:[#allocation5 + $0x44] ss:$8 sps:$4 sm:$0xff]  }
 0x100   : > { %v1923_v30 = vsub.f32 %v294_v2, %v345_v27  ;;  %392 = vadd.xlane.f32.xlu0 %v376_v28  ;;  %v1412_v27 = vld [vmem:[#allocation5 + $0x40] ss:$8 sps:$4 sm:$0xff]  }
 0x101   : > { %v1925_v31 = vsub.f32 %v302_v3, %v353_v29  ;;  %v316_v33 = vpop.xlane.xlu0 %315  ;;  %v1413_v29 = vld [vmem:[#allocation5 + $0x54] ss:$8 sps:$4 sm:$0xff]  }
 0x102   : > { %v318_v34 = vpop.xlane.xlu1 %317  ;;  %v346_v35 = vmul.f32 0.0078125, %v316_v33  ;;  %v377_v36 = vmul.f32 %v1923_v30, %v1923_v30  ;;  %v1418_v33 = vld [vmem:[#allocation5 + $0x60] ss:$8 sps:$4 sm:$0xff]  }
 0x103   : > { %v347_v37 = vmul.f32 0.0078125, %v318_v34  ;;  %v385_v40 = vmul.f32 %v1925_v31, %v1925_v31  ;;  %v1419_v34 = vld [vmem:[#allocation5 + $0x74] ss:$8 sps:$4 sm:$0xff]  }
 0x104   : > { %v1931_v38 = vsub.f32 %v295_v4, %v346_v35  ;;  %408 = vadd.xlane.f32.xlu0 %v384_v32  ;;  %394 = vadd.xlane.f32.xlu1 %v377_v36  ;;  %v1416_v32 = vld [vmem:[#allocation5 + $0x64] ss:$8 sps:$4 sm:$0xff]   ;;  %v1421_v35 = vld [vmem:[#allocation5 + $0x70] ss:$8 sps:$4 sm:$0xff]   ;;  %v1652_v36 = vmov 0  }
 0x105   : > { %v1933_v39 = vsub.f32 %v296_v5, %v347_v37  ;;  %v332_v41 = vpop.xlane.xlu0 %331  ;;  %v1406_v5 = vld [vmem:[#allocation5 + $0x20] ss:$8 sps:$4 sm:$0xff]   ;;  %668 = vmatprep.mubr.bf16.mxu0 %v1652_v36  ;;  %708 = vmatprep.mubr.bf16.mxu1 %v1652_v36 }
 0x106   : > { %v334_v42 = vpop.xlane.xlu1 %333  ;;  %v354_v43 = vmul.f32 0.0078125, %v332_v41  ;;  %v378_v44 = vmul.f32 %v1931_v38, %v1931_v38  ;;  %641 = vmatpush1.bf16.msra.mxu0 %v1406_v5  ;;  %1293 = vmatpush1.bf16.msra.mxu1 %v1406_v5 }
 0x107   : > { %v355_v45 = vmul.f32 0.0078125, %v334_v42  ;;  %v379_v48 = vmul.f32 %v1933_v39, %v1933_v39  ;;  %642 = vmatprep.subr.bf16.mxu0 %v1407_v16  ;;  %1286 = vmatprep.subr.bf16.mxu1 %v1407_v16 }
 0x108   : > { %v1939_v46 = vsub.f32 %v303_v6, %v354_v43  ;;  %410 = vadd.xlane.f32.xlu1 %v385_v40  ;;  %396 = vadd.xlane.f32.xlu0 %v378_v44 }
 0x109   : > { %v1941_v47 = vsub.f32 %v304_v7, %v355_v45  ;;  %v320_v49 = vpop.xlane.xlu0 %319 }
 0x10a   : > { %v322_v50 = vpop.xlane.xlu1 %321  ;;  %v348_v51 = vmul.f32 0.0078125, %v320_v49  ;;  %v386_v52 = vmul.f32 %v1939_v46, %v1939_v46  ;;  %643 = vmatpush1.bf16.msra.mxu0 %v1409_v19  ;;  %1294 = vmatpush1.bf16.msra.mxu1 %v1409_v19 }
 0x10b   : > { %v349_v53 = vmul.f32 0.0078125, %v322_v50  ;;  %v387_v56 = vmul.f32 %v1941_v47, %v1941_v47  ;;  %644 = vmatprep.subr.bf16.mxu0 %v1410_v26  ;;  %1287 = vmatprep.subr.bf16.mxu1 %v1410_v26  ;;  %v2002_v26 = vld [vmem:[%s2178_s2] ss:$0 sm:$0xff] }
 0x10c   : > { %v1948_v54 = vsub.f32 %v1886_v8, %v348_v51  ;;  %398 = vadd.xlane.f32.xlu1 %v379_v48  ;;  %412 = vadd.xlane.f32.xlu0 %v386_v52 }
 0x10d   : > { %v1951_v55 = vsub.f32 %v1889_v9, %v349_v53  ;;  %v336_v58 = vpop.xlane.xlu0 %335 }
 0x10e   : > { %v338_v59 = vpop.xlane.xlu1 %337  ;;  %v356_v60 = vmul.f32 0.0078125, %v336_v58  ;;  %v380_v61 = vmul.f32 %v1948_v54, %v1948_v54  ;;  %645 = vmatpush1.bf16.msra.mxu0 %v1412_v27  ;;  %1295 = vmatpush1.bf16.msra.mxu1 %v1412_v27 }
 0x10f   : > { %v357_v62 = vmul.f32 0.0078125, %v338_v59  ;;  %v381_v2 = vmul.f32 %v1951_v55, %v1951_v55  ;;  %646 = vmatprep.subr.bf16.mxu0 %v1413_v29  ;;  %1288 = vmatprep.subr.bf16.mxu1 %v1413_v29 }
 0x110   : > { %v1958_v0 = vsub.f32 %v1894_v10, %v356_v60  ;;  %414 = vadd.xlane.f32.xlu1 %v387_v56  ;;  %400 = vadd.xlane.f32.xlu0 %v380_v61 }
 0x111   : > { %v1961_v1 = vsub.f32 %v1897_v11, %v357_v62  ;;  %v324_v3 = vpop.xlane.xlu0 %323 }
 0x112   : > { %v326_v4 = vpop.xlane.xlu1 %325  ;;  %v350_v6 = vmul.f32 0.0078125, %v324_v3  ;;  %v388_v7 = vmul.f32 %v1958_v0, %v1958_v0 }
 0x113   : > { %v351_v8 = vmul.f32 0.0078125, %v326_v4  ;;  %v389_v11 = vmul.f32 %v1961_v1, %v1961_v1 }
 0x114   : > { %v1968_v9 = vsub.f32 %v1902_v12, %v350_v6  ;;  %402 = vadd.xlane.f32.xlu1 %v381_v2  ;;  %416 = vadd.xlane.f32.xlu0 %v388_v7 }
 0x115   : > { %v1971_v10 = vsub.f32 %v1905_v13, %v351_v8  ;;  %v340_v17 = vpop.xlane.xlu0 %339  ;;  %v1995_v8 = vld [vmem:[%s2177_s1] ss:$0 sm:$0xff] }
 0x116   : > { %v342_v18 = vpop.xlane.xlu1 %341  ;;  %v358_v20 = vmul.f32 0.0078125, %v340_v17  ;;  %v382_v21 = vmul.f32 %v1968_v9, %v1968_v9 }
 0x117   : > { %v359_v22 = vmul.f32 0.0078125, %v342_v18  ;;  %v383_v25 = vmul.f32 %v1971_v10, %v1971_v10 }
 0x118   : > { %v1978_v12 = vsub.f32 %v1910_v14, %v358_v20  ;;  %418 = vadd.xlane.f32.xlu1 %v389_v11  ;;  %404 = vadd.xlane.f32.xlu0 %v382_v21 }
 0x119   : > { %v1981_v13 = vsub.f32 %v1913_v15, %v359_v22  ;;  %v1415_v15 = vld [vmem:[#allocation5 + $0x50] ss:$8 sps:$4 sm:$0xff]  }
 0x11a   : > { %v390_v28 = vmul.f32 %v1978_v12, %v1978_v12  ;;  %647 = vmatpush1.bf16.msra.mxu0 %v1415_v15  ;;  %1296 = vmatpush1.bf16.msra.mxu1 %v1415_v15 }
 0x11b   : > { %v391_v14 = vmul.f32 %v1981_v13, %v1981_v13  ;;  %648 = vmatprep.subr.bf16.mxu0 %v1416_v32  ;;  %1289 = vmatprep.subr.bf16.mxu1 %v1416_v32 }
 0x11c   : > { %406 = vadd.xlane.f32.xlu1 %v383_v25  ;;  %420 = vadd.xlane.f32.xlu0 %v390_v28 }
 0x11e   : > { %649 = vmatpush1.bf16.msra.mxu0 %v1418_v33  ;;  %1297 = vmatpush1.bf16.msra.mxu1 %v1418_v33 }
 0x11f   : > { %650 = vmatprep.subr.bf16.mxu0 %v1419_v34  ;;  %1290 = vmatprep.subr.bf16.mxu1 %v1419_v34 }
 0x120   : > { %422 = vadd.xlane.f32.xlu1 %v391_v14 }
 0x122   : > { %651 = vmatpush1.bf16.msra.mxu0 %v1421_v35  ;;  %1298 = vmatpush1.bf16.msra.mxu1 %v1421_v35 }
 0x18d   : > { %v393_v37 = vpop.xlane.xlu0 %392 }
 0x18e   : > { %v424_v40 = vmul.f32 0.0078125, %v393_v37 }
 0x190   : > { %v440_v41 = vadd.f32 1e-05, %v424_v40 }
 0x191   : > { %v395_v42 = vpop.xlane.xlu1 %394  ;;  %v409_v43 = vpop.xlane.xlu0 %408 }
 0x192   : > { %1422 = vrsqrt.f32 %v440_v41  ;;  %v425_v44 = vmul.f32 0.0078125, %v395_v42  ;;  %v432_v45 = vmul.f32 0.0078125, %v409_v43 }
 0x194   : > { %v441_v48 = vadd.f32 1e-05, %v425_v44  ;;  %v448_v49 = vadd.f32 1e-05, %v432_v45 }
 0x195   : > { %v411_v50 = vpop.xlane.xlu1 %410  ;;  %v397_v51 = vpop.xlane.xlu0 %396 }
 0x196   : > { %1424 = vrsqrt.f32 %v441_v48  ;;  %v433_v52 = vmul.f32 0.0078125, %v411_v50  ;;  %v426_v53 = vmul.f32 0.0078125, %v397_v51 }
 0x197   : > { %1426 = vrsqrt.f32 %v448_v49 }
 0x198   : > { %v449_v56 = vadd.f32 1e-05, %v433_v52  ;;  %v442_v57 = vadd.f32 1e-05, %v426_v53 }
 0x199   : > { %v399_v58 = vpop.xlane.xlu1 %398  ;;  %v413_v59 = vpop.xlane.xlu0 %412 }
 0x19a   : > { %1428 = vrsqrt.f32 %v449_v56  ;;  %v427_v60 = vmul.f32 0.0078125, %v399_v58  ;;  %v434_v61 = vmul.f32 0.0078125, %v413_v59 }
 0x19b   : > { %1430 = vrsqrt.f32 %v442_v57 }
 0x19c   : > { %v1423_v62 = vpop.eup %1422  ;;  %v443_v63 = vadd.f32 1e-05, %v427_v60  ;;  %v450_v2 = vadd.f32 1e-05, %v434_v61 }
 0x19d   : > { %v415_v3 = vpop.xlane.xlu1 %414  ;;  %v401_v4 = vpop.xlane.xlu0 %400  ;;  %v472_v5 = vmul.f32 %v1423_v62, %v1917_v23 }
 0x19e   : > { %1432 = vrsqrt.f32 %v443_v63  ;;  %v435_v6 = vmul.f32 0.0078125, %v415_v3  ;;  %v428_v7 = vmul.f32 0.0078125, %v401_v4 }
 0x19f   : > { %1434 = vrsqrt.f32 %v450_v2  ;;  %v494_v22 = vmul.f32 %v1995_v8, %v472_v5 }
 0x1a0   : > { %v1425_v11 = vpop.eup %1424  ;;  %v451_v16 = vadd.f32 1e-05, %v435_v6  ;;  %v444_v17 = vadd.f32 1e-05, %v428_v7 }
 0x1a1   : > { %v1427_v18 = vpop.eup %1426  ;;  %v403_v19 = vpop.xlane.xlu1 %402  ;;  %v473_v21 = vmul.f32 %v1425_v11, %v1923_v30  ;;  %v516_v34 = vadd.f32 %v2002_v26, %v494_v22 }
 0x1a2   : > { %v417_v20 = vpop.xlane.xlu0 %416  ;;  %1436 = vrsqrt.f32 %v451_v16  ;;  %v429_v23 = vmul.f32 0.0078125, %v403_v19  ;;  %v480_v27 = vmul.f32 %v1427_v18, %v1919_v24 }
 0x1a3   : > { %v436_v25 = vmul.f32 0.0078125, %v417_v20  ;;  %1438 = vrsqrt.f32 %v444_v17  ;;  %v495_v28 = vmul.f32 %v1995_v8, %v473_v21 }
 0x1a4   : > { %v1429_v14 = vpop.eup %1428  ;;  %v445_v29 = vadd.f32 1e-05, %v429_v23  ;;  %v502_v40 = vmul.f32 %v1995_v8, %v480_v27 }
 0x1a5   : > { %v452_v15 = vadd.f32 1e-05, %v436_v25  ;;  %v1431_v32 = vpop.eup %1430  ;;  %v419_v30 = vpop.xlane.xlu1 %418  ;;  %v517_v35 = vadd.f32 %v2002_v26, %v495_v28  ;;  %v481_v37 = vmul.f32 %v1429_v14, %v1925_v31 }
 0x1a6   : > { %v405_v33 = vpop.xlane.xlu0 %404  ;;  %1440 = vrsqrt.f32 %v445_v29  ;;  %v437_v41 = vmul.f32 0.0078125, %v419_v30  ;;  %v474_v44 = vmul.f32 %v1431_v32, %v1931_v38  ;;  %v524_v31 = vadd.f32 %v2002_v26, %v502_v40 }
 0x1a7   : > { %v430_v24 = vmul.f32 0.0078125, %v405_v33  ;;  %1442 = vrsqrt.f32 %v452_v15  ;;  %v532_v42 = vpack.c.bf16 %v517_v35, %v516_v34  ;;  %v503_v43 = vmul.f32 %v1995_v8, %v481_v37 }
 0x1a8   : > { %v1433_v45 = vpop.eup %1432  ;;  %v453_v48 = vadd.f32 1e-05, %v437_v41  ;;  %v496_v57 = vmul.f32 %v1995_v8, %v474_v44 }
 0x1a9   : > { %v446_v49 = vadd.f32 1e-05, %v430_v24  ;;  %v1435_v50 = vpop.eup %1434  ;;  %v407_v51 = vpop.xlane.xlu1 %406  ;;  %669 = vmatmul.mubr.bf16.vlgmr.msra.gmra.mrb[0].mxu0 %v532_v42  ;;  %v525_v53 = vadd.f32 %v2002_v26, %v503_v43  ;;  %v475_v56 = vmul.f32 %v1433_v45, %v1933_v39 }
 0x1aa   : > { %v421_v52 = vpop.xlane.xlu0 %420  ;;  %1444 = vrsqrt.f32 %v453_v48  ;;  %v431_v58 = vmul.f32 0.0078125, %v407_v51  ;;  %678 = vmatprep.mubr.bf16.mxu0 %v1652_v36  ;;  %v482_v38 = vmul.f32 %v1435_v50, %v1939_v46  ;;  %v518_v39 = vadd.f32 %v2002_v26, %v496_v57 }
 0x1ab   : > { %v438_v59 = vmul.f32 0.0078125, %v421_v52  ;;  %1446 = vrsqrt.f32 %v446_v49  ;;  %v536_v60 = vpack.c.bf16 %v525_v53, %v524_v31  ;;  %v497_v61 = vmul.f32 %v1995_v8, %v475_v56 }
 0x1ac   : > { %v1437_v62 = vpop.eup %1436  ;;  %v447_v63 = vadd.f32 1e-05, %v431_v58  ;;  %v504_v7 = vmul.f32 %v1995_v8, %v482_v38 }
 0x1ad   : > { %v454_v2 = vadd.f32 1e-05, %v438_v59  ;;  %v1439_v3 = vpop.eup %1438  ;;  %v423_v4 = vpop.xlane.xlu1 %422  ;;  %709 = vmatmul.mubr.bf16.vlgmr.msra.gmra.mrb[0].mxu1 %v536_v60  ;;  %v519_v5 = vadd.f32 %v2002_v26, %v497_v61  ;;  %v483_v6 = vmul.f32 %v1437_v62, %v1941_v47 }
 0x1ae   : > { %1448 = vrsqrt.f32 %v447_v63  ;;  %v439_v46 = vmul.f32 0.0078125, %v423_v4  ;;  %718 = vmatprep.mubr.bf16.mxu1 %v1652_v36  ;;  %v476_v11 = vmul.f32 %v1439_v3, %v1948_v54  ;;  %v526_v21 = vadd.f32 %v2002_v26, %v504_v7 }
 0x1af   : > { %1450 = vrsqrt.f32 %v454_v2  ;;  %v533_v16 = vpack.c.bf16 %v519_v5, %v518_v39  ;;  %v505_v17 = vmul.f32 %v1995_v8, %v483_v6 }
 0x1b0   : > { %v1441_v18 = vpop.eup %1440  ;;  %v455_v19 = vadd.f32 1e-05, %v439_v46  ;;  %v498_v23 = vmul.f32 %v1995_v8, %v476_v11 }
 0x1b1   : > { %v1443_v20 = vpop.eup %1442  ;;  %679 = vmatmul.mubr.bf16.gmra.mrb[4].mxu0 %v533_v16  ;;  %v527_v47 = vadd.f32 %v2002_v26, %v505_v17  ;;  %v477_v22 = vmul.f32 %v1441_v18, %v1951_v55 }
 0x1b2   : > { %1452 = vrsqrt.f32 %v455_v19  ;;  %688 = vmatprep.mubr.bf16.mxu0 %v1652_v36  ;;  %v484_v54 = vmul.f32 %v1443_v20, %v1958_v0  ;;  %v520_v29 = vadd.f32 %v2002_v26, %v498_v23 }
 0x1b3   : > { %v537_v25 = vpack.c.bf16 %v527_v47, %v526_v21  ;;  %v499_v27 = vmul.f32 %v1995_v8, %v477_v22 }
 0x1b4   : > { %v1445_v28 = vpop.eup %1444  ;;  %v506_v55 = vmul.f32 %v1995_v8, %v484_v54 }
 0x1b5   : > { %v1447_v14 = vpop.eup %1446  ;;  %719 = vmatmul.mubr.bf16.gmra.mrb[4].mxu1 %v537_v25  ;;  %v521_v15 = vadd.f32 %v2002_v26, %v499_v27  ;;  %v485_v32 = vmul.f32 %v1445_v28, %v1961_v1 }
 0x1b6   : > { %728 = vmatprep.mubr.bf16.mxu1 %v1652_v36  ;;  %v478_v30 = vmul.f32 %v1447_v14, %v1968_v9  ;;  %v528_v37 = vadd.f32 %v2002_v26, %v506_v55 }
 0x1b7   : > { %v534_v33 = vpack.c.bf16 %v521_v15, %v520_v29  ;;  %v507_v0 = vmul.f32 %v1995_v8, %v485_v32 }
 0x1b8   : > { %v1449_v34 = vpop.eup %1448  ;;  %v500_v1 = vmul.f32 %v1995_v8, %v478_v30 }
 0x1b9   : > { %v1451_v35 = vpop.eup %1450  ;;  %689 = vmatmul.mubr.bf16.gmra.mrb[8].mxu0 %v534_v33  ;;  %v529_v40 = vadd.f32 %v2002_v26, %v507_v0  ;;  %v479_v41 = vmul.f32 %v1449_v34, %v1971_v10 }
 0x1ba   : > { %698 = vmatprep.mubr.bf16.mxu0 %v1652_v36  ;;  %v486_v24 = vmul.f32 %v1451_v35, %v1978_v12  ;;  %v522_v44 = vadd.f32 %v2002_v26, %v500_v1 }
 0x1bb   : > { %v538_v42 = vpack.c.bf16 %v529_v40, %v528_v37  ;;  %v501_v9 = vmul.f32 %v1995_v8, %v479_v41 }
 0x1bc   : > { %v1453_v43 = vpop.eup %1452  ;;  %v508_v10 = vmul.f32 %v1995_v8, %v486_v24 }
 0x1bd   : > { %729 = vmatmul.mubr.bf16.gmra.mrb[8].mxu1 %v538_v42  ;;  %v523_v45 = vadd.f32 %v2002_v26, %v501_v9  ;;  %v487_v48 = vmul.f32 %v1453_v43, %v1981_v13 }
 0x1be   : > { %738 = vmatprep.mubr.bf16.mxu1 %v1652_v36  ;;  %v530_v12 = vadd.f32 %v2002_v26, %v508_v10 }
 0x1bf   : > { %v535_v49 = vpack.c.bf16 %v523_v45, %v522_v44  ;;  %v509_v50 = vmul.f32 %v1995_v8, %v487_v48 }
 0x1c1   : > { %699 = vmatmul.mubr.bf16.gmra.mrb[12].mxu0 %v535_v49  ;;  %v531_v51 = vadd.f32 %v2002_v26, %v509_v50 }
 0x1c3   : > { %v539_v52 = vpack.c.bf16 %v531_v51, %v530_v12 }
 0x1c5   : > { %739 = vmatmul.mubr.bf16.gmra.mrb[12].mxu1 %v539_v52 }
 0x27c   : > { %v670_v31 = vpop.f32.mrb[0].mxu0 }
 0x27d   : > { %v672_v53 = vpop.f32.mrb[1].mxu0 }
 0x27e   : > { %v674_v56 = vpop.f32.mrb[2].mxu0 }
 0x27f   : > { %v1192_v57 = vpack.c.bf16 %v674_v56, %v670_v31  ;;  %v676_v13 = vpop.f32.mrb[3].mxu0 }
 0x280   : > { %v1232_v58 = vpack.c.bf16 %v676_v13, %v672_v53  ;;  %v710_v59 = vpop.f32.mrb[0].mxu1 }
 0x281   : > { %1193 = vst [vmem:[%s2056_s10] sm:$0xff] %v1192_v57   ;;  %v712_v36 = vpop.f32.mrb[1].mxu1 }
 0x282   : > { %1233 = vst [vmem:[%s2059_s27] sm:$0xff] %v1232_v58   ;;  %v714_v8 = vpop.f32.mrb[2].mxu1 }
 0x283   : > { %v1212_v26 = vpack.c.bf16 %v714_v8, %v710_v59  ;;  %v716_v38 = vpop.f32.mrb[3].mxu1 }
 0x284   : > { %v1252_v60 = vpack.c.bf16 %v716_v38, %v712_v36  ;;  %v680_v61 = vpop.f32.mrb[4].mxu0 }
 0x285   : > { %1272 = vst [vmem:[%s2056_s10 + $0x20] sm:$0xff] %v1212_v26   ;;  %v682_v62 = vpop.f32.mrb[5].mxu0 }
 0x286   : > { %1279 = vst [vmem:[%s2059_s27 + $0x20] sm:$0xff] %v1252_v60   ;;  %v684_v63 = vpop.f32.mrb[6].mxu0 }
 0x287   : > { %v1197_v2 = vpack.c.bf16 %v684_v63, %v680_v61  ;;  %v686_v3 = vpop.f32.mrb[7].mxu0 }
 0x288   : > { %v1237_v4 = vpack.c.bf16 %v686_v3, %v682_v62  ;;  %v720_v39 = vpop.f32.mrb[4].mxu1 }
 0x289   : > { %1269 = vst [vmem:[%s2056_s10 + $0x8] sm:$0xff] %v1197_v2   ;;  %v722_v5 = vpop.f32.mrb[5].mxu1 }
 0x28a   : > { %1276 = vst [vmem:[%s2059_s27 + $0x8] sm:$0xff] %v1237_v4   ;;  %v724_v6 = vpop.f32.mrb[6].mxu1 }
 0x28b   : > { %v1217_v7 = vpack.c.bf16 %v724_v6, %v720_v39  ;;  %v726_v46 = vpop.f32.mrb[7].mxu1 }
 0x28c   : > { %v1257_v11 = vpack.c.bf16 %v726_v46, %v722_v5  ;;  %v690_v16 = vpop.f32.mrb[8].mxu0 }
 0x28d   : > { %1273 = vst [vmem:[%s2056_s10 + $0x28] sm:$0xff] %v1217_v7   ;;  %v692_v17 = vpop.f32.mrb[9].mxu0 }
 0x28e   : > { %1280 = vst [vmem:[%s2059_s27 + $0x28] sm:$0xff] %v1257_v11   ;;  %v694_v18 = vpop.f32.mrb[10].mxu0 }
 0x28f   : > { %v1202_v19 = vpack.c.bf16 %v694_v18, %v690_v16  ;;  %v696_v20 = vpop.f32.mrb[11].mxu0 }
 0x290   : > { %v1242_v21 = vpack.c.bf16 %v696_v20, %v692_v17  ;;  %v730_v47 = vpop.f32.mrb[8].mxu1 }
 0x291   : > { %1270 = vst [vmem:[%s2056_s10 + $0x10] sm:$0xff] %v1202_v19   ;;  %v732_v22 = vpop.f32.mrb[9].mxu1 }
 0x292   : > { %1277 = vst [vmem:[%s2059_s27 + $0x10] sm:$0xff] %v1242_v21   ;;  %v734_v23 = vpop.f32.mrb[10].mxu1 }
 0x293   : > { %v1222_v54 = vpack.c.bf16 %v734_v23, %v730_v47  ;;  %v736_v25 = vpop.f32.mrb[11].mxu1 }
 0x294   : > { %v1262_v27 = vpack.c.bf16 %v736_v25, %v732_v22  ;;  %v700_v28 = vpop.f32.mrb[12].mxu0 }
 0x295   : > { %1274 = vst [vmem:[%s2056_s10 + $0x30] sm:$0xff] %v1222_v54   ;;  %v702_v14 = vpop.f32.mrb[13].mxu0 }
 0x296   : > { %1281 = vst [vmem:[%s2059_s27 + $0x30] sm:$0xff] %v1262_v27   ;;  %v704_v29 = vpop.f32.mrb[14].mxu0 }
 0x297   : > { %v1207_v15 = vpack.c.bf16 %v704_v29, %v700_v28  ;;  %v706_v32 = vpop.f32.mrb[15].mxu0 }
 0x298   : > { %v1247_v55 = vpack.c.bf16 %v706_v32, %v702_v14  ;;  %v740_v30 = vpop.f32.mrb[12].mxu1 }
 0x299   : > { %1271 = vst [vmem:[%s2056_s10 + $0x18] sm:$0xff] %v1207_v15   ;;  %v742_v33 = vpop.f32.mrb[13].mxu1 }
 0x29a   : > { %1278 = vst [vmem:[%s2059_s27 + $0x18] sm:$0xff] %v1247_v55   ;;  %v744_v0 = vpop.f32.mrb[14].mxu1 }
 0x29b   : > { %v1227_v34 = vpack.c.bf16 %v744_v0, %v740_v30  ;;  %v746_v35 = vpop.f32.mrb[15].mxu1 }
 0x29c   : > { %v1267_v37 = vpack.c.bf16 %v746_v35, %v742_v33 }
 0x29d   : > { %1275 = vst [vmem:[%s2056_s10 + $0x38] sm:$0xff] %v1227_v34  }
 0x29e   : > { %1282 = vst [vmem:[%s2059_s27 + $0x38] sm:$0xff] %v1267_v37  }
 0x29f   : > { %1525 = shalt.err (!%p1522_p7)
}
 0x2a0   : > { %s1526_s10 = scalar_lea.hbm %s2085_s12, 1024  ;;  %s1530_s9 = scalar_lea.hbm %s2180_s4, 4096 }
 0x2a1   : > { %p1527_p1 = scmp.ne.s32.totalorder %s2085_s12, %s1526_s10  ;;  %p1531_p5 = scmp.lt.u32.totalorder %s2085_s12, %s2180_s4 }
 0x2a2   : > { %p1532_p9 = scmp.lt.u32.totalorder %s1530_s9, %s1526_s10  ;;  %p1534_p6 = scmp.lt.u32.totalorder %s1526_s10, %s2085_s12 }
 0x2a3   : > { %p1528_p2 = pnand %p1527_p1, %p1795_p11 }
 0x2a4   : > { %p1533_p0 = por %p1532_p9, %p1531_p5 }
 0x2a5   : > { %p1529_p4 = pneg %p1528_p2 }
 0x2a6   : > { %p1535_p8 = por %p1534_p6, %p1533_p0 }
 0x2a8   : > { %p1536_p10 = pnand %p1535_p8, %p1529_p4 }
 0x2aa   : > { %1539 = shalt.err (!%p1536_p10)
}
 0x2ab   : > { %s1654_s11 = smov 64   ;;  %s1655_s29 = smov 4  }
 0x2ac   : > { %1305 = dma.vmem_to_hbm [thread:$0]  (%p1795_p11), %s2076_s17, 1024, %s2085_s12, %s910_s5, %s1654_s11, %s1654_s11, %s1655_s29  }
 0x2ad   : > { %s915_s8 = scalar_lea.sflag [#allocation9], %s1863_s6  ;;  %s1540_s23 = scalar_lea.vmem %s2078_s26, 1024 }
 0x2ae   : > { %p1541_p12 = scmp.ne.s32.totalorder %s2078_s26, %s1540_s23  ;;  %s1656_s28 = smov [#allocation8]  }
 0x2af   : > { %s1544_s30 = sshll.u32 %s1656_s28, 4  ;;  %s1545_s30 = int_to_ptr.vmem [resolvable:$false] %s1544_s30 }
 0x2b0   : > { %p1542_p13 = pnand %p1541_p12, %p1795_p11  ;;  %s1546_s7 = scalar_lea.vmem %s1545_s30, 2048 }
 0x2b1   : > { %p1547_p7 = scmp.lt.s32.totalorder %s2078_s26, %s1545_s30  ;;  %p1548_p1 = scmp.lt.s32.totalorder %s1546_s7, %s1540_s23 }
 0x2b2   : > { %p1543_p3 = pneg %p1542_p13 }
 0x2b3   : > { %p1549_p2 = por %p1548_p1, %p1547_p7 }
 0x2b5   : > { %p1550_p4 = pnand %p1549_p2, %p1543_p3 }
 0x2b7   : > { %1553 = shalt.err (!%p1550_p4)
}
 0x2b8   : > { %s1554_s17 = scalar_lea.hbm %s2090_s3, 1024  ;;  %s1558_s18 = scalar_lea.hbm %s2218_s14, 4096 }
 0x2b9   : > { %p1555_p5 = scmp.ne.s32.totalorder %s2090_s3, %s1554_s17  ;;  %p1559_p6 = scmp.lt.u32.totalorder %s2090_s3, %s2218_s14 }
 0x2ba   : > { %p1560_p8 = scmp.lt.u32.totalorder %s1558_s18, %s1554_s17  ;;  %p1562_p12 = scmp.lt.u32.totalorder %s1554_s17, %s2090_s3 }
 0x2bb   : > { %p1556_p9 = pnand %p1555_p5, %p1795_p11 }
 0x2bc   : > { %p1561_p10 = por %p1560_p8, %p1559_p6 }
 0x2bd   : > { %p1557_p0 = pneg %p1556_p9 }
 0x2be   : > { %p1563_p13 = por %p1562_p12, %p1561_p10 }
 0x2c0   : > { %p1564_p3 = pnand %p1563_p13, %p1557_p0 }
 0x2c2   : > { %1567 = shalt.err (!%p1564_p3)
}
 0x2c3   : > { %1306 = dma.vmem_to_hbm [thread:$0]  (%p1795_p11), %s2078_s26, 1024, %s2090_s3, %s915_s8, %s1654_s11, %s1654_s11, %s1655_s29  }
 0x2c4 PF: > { %s2219_s15 = sld [smem:[#allocation14_spill]]  ;;  %s2220_s9 = sld [smem:[#allocation16_spill]] }
 0x2c5   : > { %p1327_p7 = scmp.ge.s32.totalorder %s1646_s25, 2 }
 0x2ca   : > { %s963_s21 = sand.u32 1, %s2219_s15   ;;  %p2221_p1 = scmp.ne.s32.totalorder %s2220_s9, 0 }
 0x2cb   : > { %s964_s22 = scalar_lea.sflag [#allocation4], %s963_s21 }
 0x2cc   : > { %p1318_p2 = pnand %p1327_p7, %p2221_p1 }
 0x2ce   : > { %1609 = dma.done.wait (!%p1318_p2), %s964_s22, 1024  }
 0x2cf   : > { %1611 = vsyncadd (!%p1318_p2), %s964_s22, 4294966272  ;;  %s973_s16 = scalar_lea.sflag [#allocation9], %s963_s21 }
 0x2d0   : > { %1613 = dma.done.wait (!%p1318_p2), %s973_s16, 1024  }
 0x2d1   : > { %1615 = vsyncadd (!%p1318_p2), %s973_s16, 4294966272  ;;  %s26_s25 = sadd.s32 1, %s1646_s25   ;;  %s2222_s21 = sld [smem:[#allocation15_spill]] }
 0x2d2   : > { %p23_p4 = scmp.ge.s32.totalorder %s26_s25, 6   ;;  %s2223_s23 = sld [smem:[#allocation17_spill]] }
 0x2d3   : > { %s2224_s6 = sld [smem:[#allocation18_spill]]  ;;  %s2225_s18 = smov %s1622_s19 }
 0x2d4   : > { %s2226_s19 = smov %s1626_s20  ;;  %s2227_s20 = smov %s1812_s13 }
 0x2d5   : > { %s2228_s22 = smov %s1642_s24  ;;  %25 = sbr.rel (!%p23_p4) target bundleno = 13 (0xd), region = 102 }
 0x2d9   : > { %s2229_s24 = smov %s2224_s6 }
 0x2dc   :  { %978 = vsyncpa [#allocation3], 1 }
 0x2dd   :  { %980 = vsyncpa [#allocation3 + $0x1], 1 }
 0x2de   :  { %981 = vsyncpa [#allocation6], 1 }
 0x2df   :  { %982 = vsyncpa [#allocation4], 1 }
 0x2e0   :  { %984 = vsyncpa [#allocation4 + $0x1], 1 }
 0x2e1   :  { %985 = vsyncpa [#allocation9], 1 }
 0x2e2   :  { %987 = vsyncpa [#allocation9 + $0x1], 1 }

</bundles_post_ra>
